<compile_context>
chip_gen: v7x
topology: tpu7x:2x2x1
jax: 0.10.0
libtpu: 0.0.40
codegen_flags: <defaults>
</compile_context>

<pallas_src>
import functools

import jax
import jax.numpy as jnp
from jax.experimental import pallas as pl
from jax.experimental.pallas import tpu as pltpu

NEURON_AMOUNT = 32
N_OBSERVATIONS = 16   # stand-in for tetris.n_observations
N_ACTIONS = 8         # stand-in for tetris.n_actions

F_PAD = 128           # lane-dense padded width for hidden / output features
TB_MAX = 512          # max batch rows per grid step (review: 256-512 sweet spot)
NUM_LAYERS = 4


def _round_up(x, m):
    return m * pl.cdiv(x, m)


def _choose_tb(batch):
    """Batch tile: as large as possible (<=512 rows) while aiming for >=2 grid
    steps so the 'parallel' axis can actually feed both v7x TensorCores, and
    never padding a tiny batch up to a huge tile."""
    target = max(8, _round_up(pl.cdiv(batch, 2), 8))
    return min(TB_MAX, target)


def dqn_kernel(x_ref, w1_ref, w2_ref, w3_ref, w4_ref, b_ref, o_ref):
    """One batch tile of the fused 4-layer MLP.

    x_ref : (TB, n_obs) bf16   -- features NOT lane-padded (minimal input DMA)
    wK_ref: bf16 weights, (n_obs, 128) for layer 1 and (128, 128) otherwise,
            VMEM-resident via constant index_map.
    b_ref : (4, 128) f32       -- all biases folded into one operand.
    o_ref : (TB, 128) bf16     -- lane-dense output tile.
    """
    h = x_ref[...]
    w_refs = (w1_ref, w2_ref, w3_ref, w4_ref)
    for idx, w_ref in enumerate(w_refs):
        # bf16 MXU inputs, f32 accumulate; bias add + ReLU stay f32
        # (v5e VPU has no bf16 elementwise).
        acc = jnp.dot(h.astype(jnp.bfloat16), w_ref[...],
                      preferred_element_type=jnp.float32)
        acc = acc + b_ref[idx:idx + 1, :]
        if idx < NUM_LAYERS - 1:
            acc = jnp.maximum(acc, 0.0)
        h = acc
    # bf16 store halves writeback bytes; values already went through bf16
    # matmuls, so the extra rounding is negligible for Q-values.
    o_ref[...] = h.astype(o_ref.dtype)


def pack_params(params):
    """Pack logical (fan_in, fan_out) params for the kernel. Call ONCE offline
    (not inside the serving path). Layer-1 weight keeps its real K (= n_obs);
    hidden/output weights are zero-padded to lane-dense (128, 128); all biases
    are folded into a single (4, 128) f32 array. Zero padding keeps the live
    columns exact."""
    assert len(params) == NUM_LAYERS
    packed_w = []
    b_all = jnp.zeros((NUM_LAYERS, F_PAD), jnp.float32)
    for idx, (w, b) in enumerate(params):
        rows = w.shape[0] if idx == 0 else F_PAD
        wp = jnp.zeros((rows, F_PAD), jnp.bfloat16)
        wp = wp.at[: w.shape[0], : w.shape[1]].set(w.astype(jnp.bfloat16))
        packed_w.append(wp)
        b_all = b_all.at[idx, : b.shape[-1]].set(
            b.reshape(-1).astype(jnp.float32))
    return tuple(packed_w) + (b_all,)


@functools.partial(jax.jit, static_argnames=("n_actions",))
def dqn_forward(x, packed_params, *, n_actions=N_ACTIONS):
    """x: (B, n_observations) float32 -> (B, n_actions) float32."""
    B, n_obs = x.shape
    tb = _choose_tb(B)
    B_pad = _round_up(B, tb)

    # Pad the batch only; features stay at n_obs (16). ~8x less input HBM
    # traffic than padding to 128 lanes, and no extra pre-kernel pad pass when
    # the batch already divides the tile.
    if B_pad == B:
        x_pad = x.astype(jnp.bfloat16)
    else:
        x_pad = jnp.zeros((B_pad, n_obs), jnp.bfloat16).at[:B].set(
            x.astype(jnp.bfloat16))

    w1, w2, w3, w4, b_all = packed_params

    out_pad = pl.pallas_call(
        dqn_kernel,
        out_shape=jax.ShapeDtypeStruct((B_pad, F_PAD), jnp.bfloat16),
        grid=(B_pad // tb,),
        in_specs=[
            pl.BlockSpec((tb, n_obs), lambda i: (i, 0)),          # activations
            pl.BlockSpec((n_obs, F_PAD), lambda i: (0, 0)),       # W1 (VMEM-res)
            pl.BlockSpec((F_PAD, F_PAD), lambda i: (0, 0)),       # W2
            pl.BlockSpec((F_PAD, F_PAD), lambda i: (0, 0)),       # W3
            pl.BlockSpec((F_PAD, F_PAD), lambda i: (0, 0)),       # W4
            pl.BlockSpec((NUM_LAYERS, F_PAD), lambda i: (0, 0)),  # biases
        ],
        out_specs=pl.BlockSpec((tb, F_PAD), lambda i: (i, 0)),
        compiler_params=pltpu.CompilerParams(
            dimension_semantics=("parallel",)),  # shard batch grid across TCs
    )(x_pad, w1, w2, w3, w4, b_all)

    # TODO(synk): for pure action selection, fuse argmax over the live action
    # columns into the kernel so the padded bf16 slab never round-trips HBM.
    return out_pad[:B, :n_actions].astype(jnp.float32)


def init_params(key, n_obs, n_hidden, n_actions):
    """Deterministic init mimicking nn.Linear default (uniform +/- 1/sqrt(fan_in))."""
    dims = [(n_obs, n_hidden), (n_hidden, n_hidden),
            (n_hidden, n_hidden), (n_hidden, n_actions)]
    params = []
    for fan_in, fan_out in dims:
        key, kw, kb = jax.random.split(key, 3)
        bound = 1.0 / (fan_in ** 0.5)
        w = jax.random.uniform(kw, (fan_in, fan_out), jnp.float32, -bound, bound)
        b = jax.random.uniform(kb, (1, fan_out), jnp.float32, -bound, bound)
        params.append((w, b))
    return params


def ref_forward(x, params):
    """Pure-JAX reference with the same bf16-matmul / f32-accumulate math."""
    h = x
    n_layers = len(params)
    for idx, (w, b) in enumerate(params):
        h = jnp.dot(h.astype(jnp.bfloat16), w.astype(jnp.bfloat16),
                    preferred_element_type=jnp.float32) + b
        if idx < n_layers - 1:
            h = jnp.maximum(h, 0.0)
    return h


if __name__ == "__main__":
    key = jax.random.PRNGKey(0)
    key, kx, kx2 = jax.random.split(key, 3)

    params = init_params(key, N_OBSERVATIONS, NEURON_AMOUNT, N_ACTIONS)
    packed = pack_params(params)  # packed once, offline — not in serving path

    # Small check (batch=2 -> single 8-row tile).
    x_small = jax.random.normal(kx, (2, N_OBSERVATIONS), dtype=jnp.float32)
    out_small = dqn_forward(x_small, packed)
    jax.block_until_ready(out_small)
    ref_small = ref_forward(x_small, params)
    assert out_small.shape == (2, N_ACTIONS)
    assert jnp.allclose(out_small, ref_small, atol=1e-2, rtol=1e-2), \
        float(jnp.max(jnp.abs(out_small - ref_small)))

    # Larger check exercising 512-row tiles and a 2-step parallel grid.
    x_big = jax.random.normal(kx2, (1024, N_OBSERVATIONS), dtype=jnp.float32)
    out_big = dqn_forward(x_big, packed)
    jax.block_until_ready(out_big)
    ref_big = ref_forward(x_big, params)
    assert out_big.shape == (1024, N_ACTIONS)
    assert jnp.allclose(out_big, ref_big, atol=1e-2, rtol=1e-2), \
        float(jnp.max(jnp.abs(out_big - ref_big)))

    print("KERNEL_OK")
</pallas_src>

<mosaic_0001>
module attributes {stable_mosaic.version = 11 : i64} {
  func.func @dqn_kernel(%arg0: i32, %arg1: memref<8x16xbf16, #tpu.memory_space<vmem>>, %arg2: memref<16x128xbf16, #tpu.memory_space<vmem>>, %arg3: memref<128x128xbf16, #tpu.memory_space<vmem>>, %arg4: memref<128x128xbf16, #tpu.memory_space<vmem>>, %arg5: memref<128x128xbf16, #tpu.memory_space<vmem>>, %arg6: memref<4x128xf32, #tpu.memory_space<vmem>>, %arg7: memref<8x128xbf16, #tpu.memory_space<vmem>>) attributes {dimension_semantics = [#tpu.dimension_semantics<parallel>], iteration_bounds = array<i64: 1>, scalar_prefetch = 0 : i64, scratch_operands = 0 : i64, tpu.core_type = #tpu.core_type<tc>, window_params = [{transform_indices = @transform_0, window_bounds = array<i64: 8, 16>}, {pipeline_mode = #tpu.pipeline_mode<synchronous>, transform_indices = @transform_1, window_bounds = array<i64: 16, 128>}, {pipeline_mode = #tpu.pipeline_mode<synchronous>, transform_indices = @transform_2, window_bounds = array<i64: 128, 128>}, {pipeline_mode = #tpu.pipeline_mode<synchronous>, transform_indices = @transform_3, window_bounds = array<i64: 128, 128>}, {pipeline_mode = #tpu.pipeline_mode<synchronous>, transform_indices = @transform_4, window_bounds = array<i64: 128, 128>}, {pipeline_mode = #tpu.pipeline_mode<synchronous>, transform_indices = @transform_5, window_bounds = array<i64: 4, 128>}, {transform_indices = @transform_6, window_bounds = array<i64: 8, 128>}]} {
    %c0 = arith.constant 0 : index
    %c0_0 = arith.constant 0 : index
    %0 = vector.load %arg1[%c0, %c0_0] : memref<8x16xbf16, #tpu.memory_space<vmem>>, vector<8x16xbf16>
    %c0_1 = arith.constant 0 : index
    %c0_2 = arith.constant 0 : index
    %1 = vector.load %arg2[%c0_1, %c0_2] : memref<16x128xbf16, #tpu.memory_space<vmem>>, vector<16x128xbf16>
    %cst = arith.constant dense<0.000000e+00> : vector<8x128xf32>
    %2 = tpu.matmul %0, %1, %cst {dimension_numbers = #tpu.dot_dimension_numbers<[1], [0], [0], [1], [0, 0, 1, 1], [], []>} : vector<8x16xbf16>, vector<16x128xbf16>, vector<8x128xf32> -> vector<8x128xf32>
    %c0_3 = arith.constant 0 : index
    %c0_4 = arith.constant 0 : index
    %3 = vector.load %arg6[%c0_3, %c0_4] : memref<4x128xf32, #tpu.memory_space<vmem>>, vector<1x128xf32>
    %4 = vector.broadcast %3 : vector<1x128xf32> to vector<8x128xf32>
    %5 = arith.addf %2, %4 : vector<8x128xf32>
    %cst_5 = arith.constant 0.000000e+00 : f32
    %6 = vector.broadcast %cst_5 : f32 to vector<8x128xf32>
    %7 = arith.maximumf %5, %6 : vector<8x128xf32>
    %8 = arith.truncf %7 : vector<8x128xf32> to vector<8x128xbf16>
    %c0_6 = arith.constant 0 : index
    %c0_7 = arith.constant 0 : index
    %9 = vector.load %arg3[%c0_6, %c0_7] : memref<128x128xbf16, #tpu.memory_space<vmem>>, vector<128x128xbf16>
    %cst_8 = arith.constant dense<0.000000e+00> : vector<8x128xf32>
    %10 = tpu.matmul %8, %9, %cst_8 {dimension_numbers = #tpu.dot_dimension_numbers<[1], [0], [0], [1], [0, 0, 1, 1], [], []>} : vector<8x128xbf16>, vector<128x128xbf16>, vector<8x128xf32> -> vector<8x128xf32>
    %c1 = arith.constant 1 : index
    %c0_9 = arith.constant 0 : index
    %11 = vector.load %arg6[%c1, %c0_9] : memref<4x128xf32, #tpu.memory_space<vmem>>, vector<1x128xf32>
    %12 = vector.broadcast %11 : vector<1x128xf32> to vector<8x128xf32>
    %13 = arith.addf %10, %12 : vector<8x128xf32>
    %cst_10 = arith.constant 0.000000e+00 : f32
    %14 = vector.broadcast %cst_10 : f32 to vector<8x128xf32>
    %15 = arith.maximumf %13, %14 : vector<8x128xf32>
    %16 = arith.truncf %15 : vector<8x128xf32> to vector<8x128xbf16>
    %c0_11 = arith.constant 0 : index
    %c0_12 = arith.constant 0 : index
    %17 = vector.load %arg4[%c0_11, %c0_12] : memref<128x128xbf16, #tpu.memory_space<vmem>>, vector<128x128xbf16>
    %cst_13 = arith.constant dense<0.000000e+00> : vector<8x128xf32>
    %18 = tpu.matmul %16, %17, %cst_13 {dimension_numbers = #tpu.dot_dimension_numbers<[1], [0], [0], [1], [0, 0, 1, 1], [], []>} : vector<8x128xbf16>, vector<128x128xbf16>, vector<8x128xf32> -> vector<8x128xf32>
    %c2 = arith.constant 2 : index
    %c0_14 = arith.constant 0 : index
    %19 = vector.load %arg6[%c2, %c0_14] : memref<4x128xf32, #tpu.memory_space<vmem>>, vector<1x128xf32>
    %20 = vector.broadcast %19 : vector<1x128xf32> to vector<8x128xf32>
    %21 = arith.addf %18, %20 : vector<8x128xf32>
    %cst_15 = arith.constant 0.000000e+00 : f32
    %22 = vector.broadcast %cst_15 : f32 to vector<8x128xf32>
    %23 = arith.maximumf %21, %22 : vector<8x128xf32>
    %24 = arith.truncf %23 : vector<8x128xf32> to vector<8x128xbf16>
    %c0_16 = arith.constant 0 : index
    %c0_17 = arith.constant 0 : index
    %25 = vector.load %arg5[%c0_16, %c0_17] : memref<128x128xbf16, #tpu.memory_space<vmem>>, vector<128x128xbf16>
    %cst_18 = arith.constant dense<0.000000e+00> : vector<8x128xf32>
    %26 = tpu.matmul %24, %25, %cst_18 {dimension_numbers = #tpu.dot_dimension_numbers<[1], [0], [0], [1], [0, 0, 1, 1], [], []>} : vector<8x128xbf16>, vector<128x128xbf16>, vector<8x128xf32> -> vector<8x128xf32>
    %c3 = arith.constant 3 : index
    %c0_19 = arith.constant 0 : index
    %27 = vector.load %arg6[%c3, %c0_19] : memref<4x128xf32, #tpu.memory_space<vmem>>, vector<1x128xf32>
    %28 = vector.broadcast %27 : vector<1x128xf32> to vector<8x128xf32>
    %29 = arith.addf %26, %28 : vector<8x128xf32>
    %30 = arith.truncf %29 : vector<8x128xf32> to vector<8x128xbf16>
    %c0_20 = arith.constant 0 : index
    %c0_21 = arith.constant 0 : index
    %31 = vector.load %arg7[%c0_20, %c0_21] : memref<8x128xbf16, #tpu.memory_space<vmem>>, vector<8x128xbf16>
    tpu.vector_store %arg7[%c0_20, %c0_21], %30 {strides = array<i32>} : memref<8x128xbf16, #tpu.memory_space<vmem>>, vector<8x128xbf16>,
    return
  }
  func.func @transform_0(%arg0: i32) -> (i32, i32) {
    %c0_i32 = arith.constant 0 : i32
    %c0_i32_0 = arith.constant 0 : i32
    return %arg0, %c0_i32 : i32, i32
  }
  func.func @transform_1(%arg0: i32) -> (i32, i32) {
    %c0_i32 = arith.constant 0 : i32
    %c0_i32_0 = arith.constant 0 : i32
    %c0_i32_1 = arith.constant 0 : i32
    return %c0_i32, %c0_i32_0 : i32, i32
  }
  func.func @transform_2(%arg0: i32) -> (i32, i32) {
    %c0_i32 = arith.constant 0 : i32
    %c0_i32_0 = arith.constant 0 : i32
    %c0_i32_1 = arith.constant 0 : i32
    return %c0_i32, %c0_i32_0 : i32, i32
  }
  func.func @transform_3(%arg0: i32) -> (i32, i32) {
    %c0_i32 = arith.constant 0 : i32
    %c0_i32_0 = arith.constant 0 : i32
    %c0_i32_1 = arith.constant 0 : i32
    return %c0_i32, %c0_i32_0 : i32, i32
  }
  func.func @transform_4(%arg0: i32) -> (i32, i32) {
    %c0_i32 = arith.constant 0 : i32
    %c0_i32_0 = arith.constant 0 : i32
    %c0_i32_1 = arith.constant 0 : i32
    return %c0_i32, %c0_i32_0 : i32, i32
  }
  func.func @transform_5(%arg0: i32) -> (i32, i32) {
    %c0_i32 = arith.constant 0 : i32
    %c0_i32_0 = arith.constant 0 : i32
    %c0_i32_1 = arith.constant 0 : i32
    return %c0_i32, %c0_i32_0 : i32, i32
  }
  func.func @transform_6(%arg0: i32) -> (i32, i32) {
    %c0_i32 = arith.constant 0 : i32
    %c0_i32_0 = arith.constant 0 : i32
    return %arg0, %c0_i32 : i32, i32
  }
}

</mosaic_0001>

<bundles_post_ra>
// kernel: dqn_forward.1
= control target key start
LH: loop header
LB: loop body
LE: loop exit
PB: predicated region body
PF: predicated region fallthrough
CT: control target
= control target key end

     0   :  { %11 = vsyncpa [#allocation3], 0  ;;  %s839_s0 = inlined_call_operand.vmem [shape: bf16[8,16], index: 0, kind: input, shape index: {}]   ;;  %s840_s1 = inlined_call_operand.vmem [shape: bf16[16,128], index: 1, kind: input, shape index: {}]   ;;  %s841_s2 = inlined_call_operand.hbm [shape: bf16[128,128], index: 2, kind: input, shape index: {}]   ;;  %s842_s3 = inlined_call_operand.hbm [shape: bf16[128,128], index: 3, kind: input, shape index: {}]   ;;  %s843_s4 = inlined_call_operand.hbm [shape: bf16[128,128], index: 4, kind: input, shape index: {}]   ;;  %s844_s5 = inlined_call_operand.vmem [shape: f32[4,128], index: 5, kind: input, shape index: {}]   ;;  %s845_s6 = inlined_call_operand.vmem [shape: bf16[8,128], index: 6, kind: output, shape index: {}]  }
   0x1   :  { %12 = vsyncpa [#allocation5], 0  ;;  %s691_s21 = smov [#allocation4]   ;;  %s692_s23 = smov [#allocation2]  }
   0x2   :  { %s34_s22 = sshll.u32 %s691_s21, 4  ;;  %s22_s24 = sshll.u32 %s692_s23, 4  ;;  %s35_s22 = int_to_ptr.vmem [resolvable:$true] %s34_s22  ;;  %s733_s24 = int_to_ptr.vmem [resolvable:$true] %s22_s24 }
   0x3   :  { %s621_s27 = scalar_lea.hbm %s842_s3, 1024 }
   0x4   :  { %p622_p0 = scmp.ne.s32.totalorder %s842_s3, %s621_s27  ;;  %p625_p1 = scmp.lt.u32.totalorder %s621_s27, %s842_s3 }
   0x6   :  { %p627_p2 = pnand %p625_p1, %p622_p0 }
   0x8   :  { %630 = shalt.err (!%p627_p2)
}
   0x9   :  { %s631_s8 = scalar_lea.vmem %s35_s22, 1024  ;;  %p636_p4 = scmp.lt.s32.totalorder %s35_s22, %s35_s22 }
   0xa   :  { %p632_p3 = scmp.ne.s32.totalorder %s35_s22, %s631_s8  ;;  %p637_p5 = scmp.lt.s32.totalorder %s631_s8, %s631_s8 }
   0xc   :  { %p638_p6 = por %p637_p5, %p636_p4 }
   0xe   :  { %p639_p7 = pnand %p638_p6, %p632_p3 }
  0x10   :  { %642 = shalt.err (!%p639_p7)
}
  0x11   :  { %s693_s9 = smov 64   ;;  %s694_s10 = smov 4  }
  0x12   :  { %40 = dma.hbm_to_vmem [thread:$0]  %s842_s3, 1024, %s35_s22, [#allocation5], %s693_s9, %s693_s9, %s694_s10  }
  0x13   :  { %s643_s15 = scalar_lea.hbm %s841_s2, 1024 }
  0x14   :  { %p644_p8 = scmp.ne.s32.totalorder %s841_s2, %s643_s15  ;;  %p647_p9 = scmp.lt.u32.totalorder %s643_s15, %s841_s2 }
  0x16   :  { %p649_p10 = pnand %p647_p9, %p644_p8 }
  0x18   :  { %652 = shalt.err (!%p649_p10)
}
  0x19   :  { %s653_s20 = scalar_lea.vmem %s733_s24, 1024  ;;  %p658_p12 = scmp.lt.s32.totalorder %s733_s24, %s733_s24 }
  0x1a   :  { %p654_p11 = scmp.ne.s32.totalorder %s733_s24, %s653_s20  ;;  %p659_p13 = scmp.lt.s32.totalorder %s653_s20, %s653_s20 }
  0x1c   :  { %p660_p0 = por %p659_p13, %p658_p12 }
  0x1e   :  { %p661_p1 = pnand %p660_p0, %p654_p11 }
  0x20   :  { %664 = shalt.err (!%p661_p1)
}
  0x21   :  { %28 = dma.hbm_to_vmem [thread:$0]  %s841_s2, 1024, %s733_s24, [#allocation3], %s693_s9, %s693_s9, %s694_s10  }
  0x22   :  { %s695_s22 = smov [#allocation6]   ;;  %s665_s27 = scalar_lea.hbm %s843_s4, 1024 }
  0x23   :  { %s46_s23 = sshll.u32 %s695_s22, 4  ;;  %p666_p2 = scmp.ne.s32.totalorder %s843_s4, %s665_s27  ;;  %s47_s23 = int_to_ptr.vmem [resolvable:$true] %s46_s23 }
  0x24   :  { %p669_p3 = scmp.lt.u32.totalorder %s665_s27, %s843_s4 }
  0x26   :  { %p671_p4 = pnand %p669_p3, %p666_p2 }
  0x28   :  { %674 = shalt.err (!%p671_p4)
}
  0x29   :  { %s675_s8 = scalar_lea.vmem %s47_s23, 1024  ;;  %p680_p6 = scmp.lt.s32.totalorder %s47_s23, %s47_s23 }
  0x2a   :  { %p676_p5 = scmp.ne.s32.totalorder %s47_s23, %s675_s8  ;;  %p681_p7 = scmp.lt.s32.totalorder %s675_s8, %s675_s8 }
  0x2c   :  { %p682_p8 = por %p681_p7, %p680_p6 }
  0x2e   :  { %p683_p9 = pnand %p682_p8, %p676_p5 }
  0x30   :  { %686 = shalt.err (!%p683_p9)
}
  0x31   :  { %52 = dma.hbm_to_vmem [thread:$0]  %s843_s4, 1024, %s47_s23, [#allocation5], %s693_s9, %s693_s9, %s694_s10  }
  0x32   :  { %687 = dma.done.wait [#allocation3], 1024  }
  0x33   :  { %688 = vsyncadd [#allocation3], 4294966272 }
  0x34   :  { %689 = dma.done.wait [#allocation5], 2048  }
  0x35   :  { %690 = vsyncadd [#allocation5], 4294965248  ;;  %v696_v0 = vmov 0.0   ;;  %vm697_vm0 = vmmov 0   ;;  %v596_v1 = vld [vmem:[%s840_s1] sm:$0xff]   ;;  %vm79_vm1 = vcmask 130048  }
  0x36   :  { %523 = vmatprep.subr.bf16.mxu0 %v696_v0  ;;  %525 = vmatprep.mubr.msk.bf16.mxu0 %vm697_vm0, %v696_v0  ;;  %v65_v2 = vld [vmem:[%s839_s0] sm:$0xf]  ;;  %v597_v3 = vld [vmem:[#allocation2] sm:$0xff]   ;;  %v598_v4 = vld [vmem:[#allocation2 + $0x8] sm:$0xff]  }
  0x37   :  { %529 = vmatprep.subr.bf16.mxu1 %v696_v0  ;;  %545 = vmatprep.mubr.msk.bf16.mxu1 %vm697_vm0, %v696_v0  ;;  %v599_v5 = vld [vmem:[#allocation2 + $0x10] sm:$0xff]   ;;  %v600_v6 = vld [vmem:[#allocation2 + $0x18] sm:$0xff]   ;;  %v601_v7 = vld [vmem:[#allocation2 + $0x20] sm:$0xff]  }
  0x38   :  { %524 = vmatpush3.bf16.msra.mxu0 %v596_v1  ;;  %530 = vmatpush3.bf16.msra.mxu1 %v597_v3  ;;  %v602_v8 = vld [vmem:[#allocation2 + $0x28] sm:$0xff]   ;;  %v603_v9 = vld [vmem:[#allocation2 + $0x30] sm:$0xff]   ;;  %v604_v10 = vld [vmem:[#allocation2 + $0x38] sm:$0xff]  }
  0x39   :  { %549 = vmatprep.subr.bf16.mxu0 %v696_v0  ;;  %531 = vmatprep.subr.bf16.mxu1 %v696_v0  ;;  %v605_v11 = vld [vmem:[#allocation4] sm:$0xff]   ;;  %v606_v12 = vld [vmem:[#allocation4 + $0x8] sm:$0xff]   ;;  %v607_v13 = vld [vmem:[#allocation4 + $0x10] sm:$0xff]  }
  0x3a   :  { %v608_v14 = vld [vmem:[#allocation4 + $0x18] sm:$0xff]   ;;  %v609_v15 = vld [vmem:[#allocation4 + $0x20] sm:$0xff]   ;;  %v610_v16 = vld [vmem:[#allocation4 + $0x28] sm:$0xff]  }
  0x3b   :  { %526 = vmatmul.mubr.msk.bf16.vlgmr.msra.gmra.mrb[0].mxu0 %vm79_vm1, %v65_v2  ;;  %v464_v17 = vld [vmem:[%s844_s5] ss:$0 sm:$0xff]  ;;  %v611_v25 = vld [vmem:[#allocation4 + $0x30] sm:$0xff]   ;;  %v613_v27 = vld [vmem:[#allocation6] sm:$0xff]  }
  0x3c   :  { %565 = vmatprep.mubr.msk.bf16.mxu0 %vm697_vm0, %v696_v0  ;;  %532 = vmatpush3.bf16.msra.mxu1 %v598_v4  ;;  %v612_v26 = vld [vmem:[#allocation4 + $0x38] sm:$0xff]   ;;  %v614_v28 = vld [vmem:[#allocation6 + $0x8] sm:$0xff]   ;;  %v615_v29 = vld [vmem:[#allocation6 + $0x10] sm:$0xff]  }
  0x3d   :  { %533 = vmatprep.subr.bf16.mxu1 %v696_v0  ;;  %550 = vmatpush3.bf16.msra.mxu0 %v605_v11  ;;  %v616_v30 = vld [vmem:[#allocation6 + $0x18] sm:$0xff]   ;;  %v617_v31 = vld [vmem:[#allocation6 + $0x20] sm:$0xff]   ;;  %v618_v32 = vld [vmem:[#allocation6 + $0x28] sm:$0xff]  }
  0x3e   :  { %551 = vmatprep.subr.bf16.mxu0 %v696_v0  ;;  %v467_v33 = vld [vmem:[%s844_s5 + $0x1] ss:$0 sm:$0xff]  ;;  %v619_v41 = vld [vmem:[#allocation6 + $0x30] sm:$0xff]   ;;  %v476_v43 = vld [vmem:[%s844_s5 + $0x2] ss:$0 sm:$0xff] }
  0x3f   :  { %v620_v42 = vld [vmem:[#allocation6 + $0x38] sm:$0xff]  }
  0x40   :  { %534 = vmatpush3.bf16.msra.mxu1 %v599_v5  ;;  %v485_v51 = vld [vmem:[%s844_s5 + $0x3] ss:$0 sm:$0xff] }
  0x41   :  { %535 = vmatprep.subr.bf16.mxu1 %v696_v0  ;;  %552 = vmatpush3.bf16.msra.mxu0 %v606_v12 }
  0x42   :  { %553 = vmatprep.subr.bf16.mxu0 %v696_v0 }
  0x44   :  { %536 = vmatpush3.bf16.msra.mxu1 %v600_v6 }
  0x45   :  { %537 = vmatprep.subr.bf16.mxu1 %v696_v0  ;;  %554 = vmatpush3.bf16.msra.mxu0 %v607_v13 }
  0x46   :  { %555 = vmatprep.subr.bf16.mxu0 %v696_v0 }
  0x48   :  { %538 = vmatpush3.bf16.msra.mxu1 %v601_v7 }
  0x49   :  { %539 = vmatprep.subr.bf16.mxu1 %v696_v0  ;;  %556 = vmatpush3.bf16.msra.mxu0 %v608_v14 }
  0x4a   :  { %557 = vmatprep.subr.bf16.mxu0 %v696_v0 }
  0x4c   :  { %540 = vmatpush3.bf16.msra.mxu1 %v602_v8 }
  0x4d   :  { %541 = vmatprep.subr.bf16.mxu1 %v696_v0  ;;  %558 = vmatpush3.bf16.msra.mxu0 %v609_v15 }
  0x4e   :  { %559 = vmatprep.subr.bf16.mxu0 %v696_v0 }
  0x50   :  { %542 = vmatpush3.bf16.msra.mxu1 %v603_v9 }
  0x51   :  { %543 = vmatprep.subr.bf16.mxu1 %v696_v0  ;;  %560 = vmatpush3.bf16.msra.mxu0 %v610_v16 }
  0x52   :  { %561 = vmatprep.subr.bf16.mxu0 %v696_v0 }
  0x54   :  { %544 = vmatpush3.bf16.msra.mxu1 %v604_v10 }
  0x55   :  { %569 = vmatprep.subr.bf16.mxu1 %v696_v0  ;;  %562 = vmatpush3.bf16.msra.mxu0 %v611_v25 }
  0x56   :  { %563 = vmatprep.subr.bf16.mxu0 %v696_v0 }
  0x59   :  { %564 = vmatpush3.bf16.msra.mxu0 %v612_v26 }
 0x10e   :  { %v117_v18 = vpop.f32.mrb[0].mxu0 }
 0x10f   :  { %v118_v19 = vadd.f32 %v464_v17, %v117_v18  ;;  %v527_v20 = vpop.f32.mrb[1].mxu0 }
 0x110   :  { %v120_v21 = vpop.f32.mrb[2].mxu0 }
 0x111   :  { %v123_v22 = vmax.f32 %v118_v19, 0.0  ;;  %v528_v23 = vpop.f32.mrb[3].mxu0 }
 0x113   :  { %v124_v24 = vpack.c.bf16 %v123_v22, %v123_v22 }
 0x115   :  { %546 = vmatmul.mubr.bf16.vlgmr.msra.gmra.mrb[0].mxu1 %v124_v24 }
 0x116   :  { %585 = vmatprep.mubr.msk.bf16.mxu1 %vm697_vm0, %v696_v0  ;;  %570 = vmatpush3.bf16.msra.mxu1 %v613_v27 }
 0x117   :  { %571 = vmatprep.subr.bf16.mxu1 %v696_v0 }
 0x11a   :  { %572 = vmatpush3.bf16.msra.mxu1 %v614_v28 }
 0x11b   :  { %573 = vmatprep.subr.bf16.mxu1 %v696_v0 }
 0x11e   :  { %574 = vmatpush3.bf16.msra.mxu1 %v615_v29 }
 0x11f   :  { %575 = vmatprep.subr.bf16.mxu1 %v696_v0 }
 0x122   :  { %576 = vmatpush3.bf16.msra.mxu1 %v616_v30 }
 0x123   :  { %577 = vmatprep.subr.bf16.mxu1 %v696_v0 }
 0x126   :  { %578 = vmatpush3.bf16.msra.mxu1 %v617_v31 }
 0x127   :  { %579 = vmatprep.subr.bf16.mxu1 %v696_v0 }
 0x12a   :  { %580 = vmatpush3.bf16.msra.mxu1 %v618_v32 }
 0x12b   :  { %581 = vmatprep.subr.bf16.mxu1 %v696_v0 }
 0x12e   :  { %582 = vmatpush3.bf16.msra.mxu1 %v619_v41 }
 0x12f   :  { %583 = vmatprep.subr.bf16.mxu1 %v696_v0 }
 0x132   :  { %584 = vmatpush3.bf16.msra.mxu1 %v620_v42 }
 0x1e8   :  { %v228_v34 = vpop.f32.mrb[0].mxu1 }
 0x1e9   :  { %v229_v35 = vadd.f32 %v467_v33, %v228_v34  ;;  %v547_v36 = vpop.f32.mrb[1].mxu1 }
 0x1ea   :  { %v231_v37 = vpop.f32.mrb[2].mxu1 }
 0x1eb   :  { %v234_v38 = vmax.f32 %v229_v35, 0.0  ;;  %v548_v39 = vpop.f32.mrb[3].mxu1 }
 0x1ed   :  { %v235_v40 = vpack.c.bf16 %v234_v38, %v234_v38 }
 0x1ef   :  { %566 = vmatmul.mubr.bf16.vlgmr.msra.gmra.mrb[4].mxu0 %v235_v40 }
 0x2c2   :  { %v339_v44 = vpop.f32.mrb[4].mxu0 }
 0x2c3   :  { %v340_v45 = vadd.f32 %v476_v43, %v339_v44  ;;  %v567_v46 = vpop.f32.mrb[5].mxu0 }
 0x2c4   :  { %v342_v47 = vpop.f32.mrb[6].mxu0 }
 0x2c5   :  { %v345_v48 = vmax.f32 %v340_v45, 0.0  ;;  %v568_v49 = vpop.f32.mrb[7].mxu0 }
 0x2c7   :  { %v346_v50 = vpack.c.bf16 %v345_v48, %v345_v48 }
 0x2c9   :  { %586 = vmatmul.mubr.bf16.vlgmr.msra.gmra.mrb[4].mxu1 %v346_v50 }
 0x39c   :  { %v450_v52 = vpop.f32.mrb[4].mxu1 }
 0x39d   :  { %v451_v53 = vadd.f32 %v485_v51, %v450_v52  ;;  %v587_v54 = vpop.f32.mrb[5].mxu1 }
 0x39e   :  { %v453_v55 = vpop.f32.mrb[6].mxu1 }
 0x39f   :  { %v456_v56 = vpack.c.bf16 %v451_v53, %v451_v53  ;;  %v588_v57 = vpop.f32.mrb[7].mxu1 }
 0x3a1   :  { %457 = vst [vmem:[%s845_s6] sm:$0xf] %v456_v56 }
 0x3a2   :  { %462 = vsyncpa [#allocation3], 1 }
 0x3a3   :  { %463 = vsyncpa [#allocation5], 1 }

</bundles_post_ra>
